<compile_context>
chip_gen: v6e
topology: v6e:2x2x1
jax: 0.10.0
libtpu: 0.0.40
codegen_flags: <defaults>
</compile_context>

<pallas_src>
import math

import jax
import jax.numpy as jnp
from jax.experimental import pallas as pl
from jax.experimental.pallas import tpu as pltpu


def _round_up(n, m):
    return ((n + m - 1) // m) * m


def score_network_kernel(x_ref, w1_ref, b1_ref, w2_ref, b2_ref, o_ref):
    """One batch tile: fc2(relu(fc1(x))). Weights/biases are VMEM-resident."""
    # fc1 on the MXU; operands in the weights' dtype (bf16 or f32), f32 acc.
    x = x_ref[...].astype(w1_ref.dtype)
    h = jnp.dot(x, w1_ref[...], preferred_element_type=jnp.float32)
    # Bias + ReLU in f32 on the VPU (v5e has no bf16 VPU path).
    h = jnp.maximum(h + b1_ref[...], 0.0)
    # fc2: post-ReLU activation is cast to the weights' dtype before the MXU
    # (documented precision loss when weights are bf16); accumulation is f32.
    out = jnp.dot(h.astype(w2_ref.dtype), w2_ref[...],
                  preferred_element_type=jnp.float32)
    o_ref[...] = (out + b2_ref[...]).astype(o_ref.dtype)


def prepare_params(w1, b1, w2, b2, *, mxu_dtype=jnp.float32):
    """One-time parameter prep (hoisted out of the per-call path).

    Weights are stored [in_features, out_features] (transpose of PyTorch's
    nn.Linear [out, in]) and optionally cast to bf16 for the MXU; biases are
    reshaped to (1, out) and kept f32 for the VPU bias-add.
    """
    return (w1.astype(mxu_dtype),
            jnp.asarray(b1, jnp.float32).reshape(1, -1),
            w2.astype(mxu_dtype),
            jnp.asarray(b2, jnp.float32).reshape(1, -1))


def score_network_forward(x, w1, b1, w2, b2, *, block_batch=1024):
    """Pallas TPU forward pass of ScoreNetwork: fc2(relu(fc1(x))).

    Expects params already prepared via `prepare_params` (weights [in, out],
    biases (1, out) f32).  No per-call weight padding/casting is performed.
    """
    out_dtype = x.dtype
    batch, input_dim = x.shape
    hidden_dim = w1.shape[1]
    output_dim = w2.shape[1]

    # Sublane packing for the x tile's second-to-last dim (8 for 32-bit x,
    # 16 for 16-bit x).
    sublane = 16 if jnp.dtype(x.dtype).itemsize == 2 else 8

    # Spread the batch evenly over the minimal number of <= block_batch tiles
    # so padding waste is at most ~one sublane of rows; for batch > block_batch
    # the grid has >=2 steps, which is what lets "parallel" shard across the
    # two v7x TensorCores.
    n_tiles = pl.cdiv(batch, block_batch)
    tb = max(sublane, _round_up(pl.cdiv(batch, n_tiles), sublane))
    batch_p = _round_up(batch, tb)

    # Only batch-axis padding (no feature-lane padding; zero pad is exact and
    # the garbage output rows are sliced off below).
    if batch_p != batch:
        x_in = jnp.zeros((batch_p, input_dim), x.dtype).at[:batch, :].set(x)
    else:
        x_in = x

    grid = (batch_p // tb,)

    # Weights/biases: same block every grid step -> DMA'd once, VMEM-resident.
    def resident(shape):
        return pl.BlockSpec(shape, lambda i: (0, 0))

    flops = 2 * batch_p * (input_dim * hidden_dim + hidden_dim * output_dim)
    bytes_accessed = (x_in.size * x_in.dtype.itemsize
                      + w1.size * w1.dtype.itemsize
                      + b1.size * b1.dtype.itemsize
                      + w2.size * w2.dtype.itemsize
                      + b2.size * b2.dtype.itemsize
                      + batch_p * output_dim * jnp.dtype(out_dtype).itemsize)

    out = pl.pallas_call(
        score_network_kernel,
        out_shape=jax.ShapeDtypeStruct((batch_p, output_dim), out_dtype),
        grid=grid,
        in_specs=[
            # x: tiled over batch, native feature width (full-dim last axis).
            pl.BlockSpec((tb, input_dim), lambda i: (i, 0)),
            resident((input_dim, hidden_dim)),   # W1
            resident((1, hidden_dim)),           # b1
            resident((hidden_dim, output_dim)),  # W2
            resident((1, output_dim)),           # b2
        ],
        # Output emitted at native output_dim width -> no padded slab + slice.
        out_specs=pl.BlockSpec((tb, output_dim), lambda i: (i, 0)),
        compiler_params=pltpu.CompilerParams(
            dimension_semantics=("parallel",),
        ),
        cost_estimate=pl.CostEstimate(
            flops=flops, transcendentals=0, bytes_accessed=bytes_accessed),
    )(x_in, w1, b1, w2, b2)

    return out[:batch] if batch_p != batch else out


def init_linear_params(key, in_features, out_features, dtype=jnp.float32):
    """Deterministic init matching nn.Linear's default U(-1/sqrt(fan_in), ...)."""
    k_w, k_b = jax.random.split(key)
    bound = 1.0 / math.sqrt(in_features)
    # stored as [in, out] (transposed relative to PyTorch) for x @ W
    w = jax.random.uniform(k_w, (in_features, out_features), dtype,
                           minval=-bound, maxval=bound)
    b = jax.random.uniform(k_b, (out_features,), dtype,
                           minval=-bound, maxval=bound)
    return w, b


def reference_forward(x, w1, b1, w2, b2):
    h = jnp.maximum(x @ w1 + b1.reshape(1, -1), 0.0)
    return h @ w2 + b2.reshape(1, -1)


if __name__ == "__main__":
    # Shapes consistent with the module's forward:
    # x: [batch, input_dim], fc1: input_dim -> hidden_dim, fc2: hidden_dim -> output_dim
    batch, input_dim, hidden_dim, output_dim = 8, 16, 32, 16

    key = jax.random.PRNGKey(0)
    k_x, k_fc1, k_fc2 = jax.random.split(key, 3)

    x = jax.random.normal(k_x, (batch, input_dim), dtype=jnp.float32)
    w1, b1 = init_linear_params(k_fc1, input_dim, hidden_dim)
    w2, b2 = init_linear_params(k_fc2, hidden_dim, output_dim)

    ref = reference_forward(x, w1, b1, w2, b2)

    # 1) Full-f32 path (params prepared once, no per-call casts) — tight match.
    p_f32 = prepare_params(w1, b1, w2, b2, mxu_dtype=jnp.float32)
    out_f32 = jax.block_until_ready(score_network_forward(x, *p_f32))
    assert out_f32.shape == (batch, output_dim)
    assert jnp.allclose(out_f32, ref, atol=1e-5, rtol=1e-5)

    # 2) bf16 MXU-operand path (weights cast once at prep time), f32 accumulate.
    p_bf16 = prepare_params(w1, b1, w2, b2, mxu_dtype=jnp.bfloat16)
    out_bf16 = jax.block_until_ready(score_network_forward(x, *p_bf16))
    assert out_bf16.shape == (batch, output_dim)
    assert jnp.allclose(out_bf16, ref, atol=3e-2, rtol=3e-2)

    # 3) Multi-tile batch grid (grid > 1, batch not a multiple of the tile).
    batch2 = 40
    x2 = jax.random.normal(jax.random.PRNGKey(1), (batch2, input_dim), jnp.float32)
    out2 = jax.block_until_ready(
        score_network_forward(x2, *p_f32, block_batch=16))
    ref2 = reference_forward(x2, w1, b1, w2, b2)
    assert out2.shape == (batch2, output_dim)
    assert jnp.allclose(out2, ref2, atol=1e-5, rtol=1e-5)

    print("KERNEL_OK")
</pallas_src>

<mosaic_0001>
module attributes {stable_mosaic.version = 11 : i64} {
  func.func @score_network_kernel(%arg0: i32, %arg1: memref<8x16xf32, #tpu.memory_space<vmem>>, %arg2: memref<16x32xf32, #tpu.memory_space<vmem>>, %arg3: memref<1x32xf32, #tpu.memory_space<vmem>>, %arg4: memref<32x16xf32, #tpu.memory_space<vmem>>, %arg5: memref<1x16xf32, #tpu.memory_space<vmem>>, %arg6: memref<8x16xf32, #tpu.memory_space<vmem>>) attributes {dimension_semantics = [#tpu.dimension_semantics<parallel>], iteration_bounds = array<i64: 1>, scalar_prefetch = 0 : i64, scratch_operands = 0 : i64, tpu.core_type = #tpu.core_type<tc>, window_params = [{transform_indices = @transform_0, window_bounds = array<i64: 8, 16>}, {pipeline_mode = #tpu.pipeline_mode<synchronous>, transform_indices = @transform_1, window_bounds = array<i64: 16, 32>}, {pipeline_mode = #tpu.pipeline_mode<synchronous>, transform_indices = @transform_2, window_bounds = array<i64: 1, 32>}, {pipeline_mode = #tpu.pipeline_mode<synchronous>, transform_indices = @transform_3, window_bounds = array<i64: 32, 16>}, {pipeline_mode = #tpu.pipeline_mode<synchronous>, transform_indices = @transform_4, window_bounds = array<i64: 1, 16>}, {transform_indices = @transform_5, window_bounds = array<i64: 8, 16>}]} {
    %c0 = arith.constant 0 : index
    %c0_0 = arith.constant 0 : index
    %0 = vector.load %arg1[%c0, %c0_0] : memref<8x16xf32, #tpu.memory_space<vmem>>, vector<8x16xf32>
    %c0_1 = arith.constant 0 : index
    %c0_2 = arith.constant 0 : index
    %1 = vector.load %arg2[%c0_1, %c0_2] : memref<16x32xf32, #tpu.memory_space<vmem>>, vector<16x32xf32>
    %cst = arith.constant dense<0.000000e+00> : vector<8x32xf32>
    %2 = tpu.matmul %0, %1, %cst {dimension_numbers = #tpu.dot_dimension_numbers<[1], [0], [0], [1], [0, 0, 1, 1], [], []>} : vector<8x16xf32>, vector<16x32xf32>, vector<8x32xf32> -> vector<8x32xf32>
    %c0_3 = arith.constant 0 : index
    %c0_4 = arith.constant 0 : index
    %3 = vector.load %arg3[%c0_3, %c0_4] : memref<1x32xf32, #tpu.memory_space<vmem>>, vector<1x32xf32>
    %4 = vector.broadcast %3 : vector<1x32xf32> to vector<8x32xf32>
    %5 = arith.addf %2, %4 : vector<8x32xf32>
    %cst_5 = arith.constant 0.000000e+00 : f32
    %6 = vector.broadcast %cst_5 : f32 to vector<8x32xf32>
    %7 = arith.maximumf %5, %6 : vector<8x32xf32>
    %c0_6 = arith.constant 0 : index
    %c0_7 = arith.constant 0 : index
    %8 = vector.load %arg4[%c0_6, %c0_7] : memref<32x16xf32, #tpu.memory_space<vmem>>, vector<32x16xf32>
    %cst_8 = arith.constant dense<0.000000e+00> : vector<8x16xf32>
    %9 = tpu.matmul %7, %8, %cst_8 {dimension_numbers = #tpu.dot_dimension_numbers<[1], [0], [0], [1], [0, 0, 1, 1], [], []>} : vector<8x32xf32>, vector<32x16xf32>, vector<8x16xf32> -> vector<8x16xf32>
    %c0_9 = arith.constant 0 : index
    %c0_10 = arith.constant 0 : index
    %10 = vector.load %arg5[%c0_9, %c0_10] : memref<1x16xf32, #tpu.memory_space<vmem>>, vector<1x16xf32>
    %11 = vector.broadcast %10 : vector<1x16xf32> to vector<8x16xf32>
    %12 = arith.addf %9, %11 : vector<8x16xf32>
    %c0_11 = arith.constant 0 : index
    %c0_12 = arith.constant 0 : index
    %13 = vector.load %arg6[%c0_11, %c0_12] : memref<8x16xf32, #tpu.memory_space<vmem>>, vector<8x16xf32>
    tpu.vector_store %arg6[%c0_11, %c0_12], %12 {strides = array<i32>} : memref<8x16xf32, #tpu.memory_space<vmem>>, vector<8x16xf32>,
    return
  }
  func.func @transform_0(%arg0: i32) -> (i32, i32) {
    %c0_i32 = arith.constant 0 : i32
    %c0_i32_0 = arith.constant 0 : i32
    return %arg0, %c0_i32 : i32, i32
  }
  func.func @transform_1(%arg0: i32) -> (i32, i32) {
    %c0_i32 = arith.constant 0 : i32
    %c0_i32_0 = arith.constant 0 : i32
    %c0_i32_1 = arith.constant 0 : i32
    return %c0_i32, %c0_i32_0 : i32, i32
  }
  func.func @transform_2(%arg0: i32) -> (i32, i32) {
    %c0_i32 = arith.constant 0 : i32
    %c0_i32_0 = arith.constant 0 : i32
    %c0_i32_1 = arith.constant 0 : i32
    return %c0_i32, %c0_i32_0 : i32, i32
  }
  func.func @transform_3(%arg0: i32) -> (i32, i32) {
    %c0_i32 = arith.constant 0 : i32
    %c0_i32_0 = arith.constant 0 : i32
    %c0_i32_1 = arith.constant 0 : i32
    return %c0_i32, %c0_i32_0 : i32, i32
  }
  func.func @transform_4(%arg0: i32) -> (i32, i32) {
    %c0_i32 = arith.constant 0 : i32
    %c0_i32_0 = arith.constant 0 : i32
    %c0_i32_1 = arith.constant 0 : i32
    return %c0_i32, %c0_i32_0 : i32, i32
  }
  func.func @transform_5(%arg0: i32) -> (i32, i32) {
    %c0_i32 = arith.constant 0 : i32
    %c0_i32_0 = arith.constant 0 : i32
    return %arg0, %c0_i32 : i32, i32
  }
}

</mosaic_0001>

<bundles_post_ra>
// kernel: tpu_custom_call.1
= control target key start
LH: loop header
LB: loop body
LE: loop exit
PB: predicated region body
PF: predicated region fallthrough
CT: control target
= control target key end

     0   :  { %v261_v1 = vmov 0.0   ;;  %vm262_vm0 = vmmov 0   ;;  %s326_s0 = inlined_call_operand.vmem [shape: f32[8,16], index: 0, kind: input, shape index: {}]   ;;  %s327_s1 = inlined_call_operand.vmem [shape: f32[16,32], index: 1, kind: input, shape index: {}]   ;;  %s328_s2 = inlined_call_operand.vmem [shape: f32[1,32], index: 2, kind: input, shape index: {}]   ;;  %s329_s3 = inlined_call_operand.vmem [shape: f32[32,16], index: 3, kind: input, shape index: {}]   ;;  %s330_s4 = inlined_call_operand.vmem [shape: f32[1,16], index: 4, kind: input, shape index: {}]   ;;  %s331_s5 = inlined_call_operand.hbm [shape: f32[8,16], index: 5, kind: output, shape index: {}]  }
   0x1   :  { %v23_v0 = vld [vmem:[%s327_s1 + $0x8] sm:$0xff]  ;;  %218 = vmatprep.subr.mxu0 %v261_v1  ;;  %v22_v2 = vld [vmem:[%s327_s1] sm:$0xff]  ;;  %222 = vmatprep.mubr.msk.f32.mxu0 %vm262_vm0, %v261_v1  ;;  %v109_v3 = vld [vmem:[%s329_s3 + $0x18] sm:$0xff] }
   0x2   :  { %10 = vsyncpa [#allocation3], 0  ;;  %219 = vmatpush3.msra.mxu0 %v23_v0  ;;  %v21_v4 = vld [vmem:[%s326_s0] sm:$0xff]  ;;  %vm31_vm1 = vcmask 130048   ;;  %225 = vmatprep.subr.mxu1 %v261_v1  ;;  %v108_v5 = vld [vmem:[%s329_s3 + $0x10] sm:$0xff]  ;;  %vm117_vm2 = vcmask 261120  }
   0x3   :  { %220 = vmatprep.subr.mxu0 %v261_v1  ;;  %226 = vmatpush3.msra.mxu1 %v109_v3  ;;  %v107_v6 = vld [vmem:[%s329_s3 + $0x8] sm:$0xff]  ;;  %v106_v7 = vld [vmem:[%s329_s3] sm:$0xff]  ;;  %s263_s9 = smov [#allocation2]  }
   0x4   :  { %221 = vmatpush3.msra.mxu0 %v22_v2  ;;  %227 = vmatprep.subr.mxu1 %v261_v1  ;;  %v206_v8 = vld [vmem:[%s328_s2] ss:$0 sm:$0xff]  ;;  %s198_s10 = sshll.u32 %s263_s9, 4  ;;  %s199_s10 = int_to_ptr.vmem [resolvable:$true] %s198_s10 }
   0x5   :  { %223 = vmatmul.mubr.msk.f32.vlgmr.msra.gmra.mxu0 %vm31_vm1, %v21_v4  ;;  %233 = vmatprep.mubr.msk.f32.mxu1 %vm262_vm0, %v261_v1  ;;  %v208_v13 = vld [vmem:[%s330_s4] ss:$0 sm:$0xff]  ;;  %s239_s3 = scalar_lea.vmem %s199_s10, 128  ;;  %p244_p1 = scmp.lt.s32.totalorder %s199_s10, %s199_s10 }
   0x6   :  { %228 = vmatpush3.msra.mxu1 %v108_v5  ;;  %p240_p0 = scmp.ne.s32.totalorder %s199_s10, %s239_s3  ;;  %p245_p2 = scmp.lt.s32.totalorder %s239_s3, %s239_s3 }
   0x7   :  { %229 = vmatprep.subr.mxu1 %v261_v1 }
   0x8   :  { %230 = vmatpush3.msra.mxu1 %v107_v6  ;;  %p246_p3 = por %p245_p2, %p244_p1 }
   0x9   :  { %231 = vmatprep.subr.mxu1 %v261_v1 }
   0xa   :  { %232 = vmatpush3.msra.mxu1 %v106_v7  ;;  %p247_p4 = pnand %p246_p3, %p240_p0 }
  0xc5   :  { %v101_v9 = vpop.f32.mrf.mxu0 }
  0xc6   :  { %v102_v10 = vadd.f32 %v206_v8, %v101_v9 }
  0xc7   :  { %v224_v11 = vpop.f32.mrf.mxu0 }
  0xc8   :  { %v105_v12 = vmax.f32 %v102_v10, 0.0 }
  0xca   :  { %234 = vmatmul.mubr.msk.f32.vlgmr.msra.gmra.mxu1 %vm117_vm2, %v105_v12 }
 0x18a   :  { %v187_v14 = vpop.f32.mrf.mxu1 }
 0x18b   :  { %v188_v15 = vadd.f32 %v208_v13, %v187_v14 }
 0x18c   :  { %v235_v16 = vpop.f32.mrf.mxu1 }
 0x18d   :  { %191 = vst.msk [vmem:[#allocation2] sm:$0xff] %vm31_vm1, %v188_v15 }
 0x18e   :  { %250 = shalt.err (!%p247_p4)
}
 0x18f   :  { %201 = dma.vmem_to_hbm [thread:$0]  %s199_s10, 128, %s331_s5, [#allocation3]  }
 0x190   :  { %259 = dma.done.wait [#allocation3], 128  }
 0x191   :  { %260 = vsyncadd [#allocation3], 4294967168 }
 0x192   :  { %205 = vsyncpa [#allocation3], 1 }

</bundles_post_ra>
